<compile_context>
chip_gen: v6e
topology: v6e:2x2x1
jax: 0.10.0
libtpu: 0.0.40
codegen_flags: <defaults>
</compile_context>

<pallas_src>
import functools

import jax
import jax.numpy as jnp
import numpy as np
from jax.experimental import pallas as pl
from jax.experimental.pallas import tpu as pltpu

# ----------------------- model sizes (small test config) -----------------------
V = 64            # number of vertices
K = 8             # number of eigenvectors
C = 4             # C_in_channels (inner DiffusionNetBlock width)
CW = 8            # C_width (Conv1d hidden channels)
HID = (16, 16)    # conv_hidden_dims -> MiniMLP layer sizes [3, 16, 16, 1]
TILE_V = 16       # vertex row tile for the main kernel (grid = V // TILE_V)


# =============================== Pallas kernels ================================

def _diffusion_kernel(x_ref, mass_ref, evecsT_ref, evecs_ref, evals_ref,
                      time_ref, xd_ref):
    """LearnedTimeDiffusion (method='spectral'). All operands are tiny
    (O(V*K + V*C)) and live whole in VMEM; evecsT is pre-transposed in prep."""
    f32 = jnp.float32
    xm = x_ref[...] * mass_ref[...]                                     # (V, C)
    x_spec = jnp.dot(evecsT_ref[...], xm, preferred_element_type=f32)   # (K, C)
    coefs = jnp.exp(-(evals_ref[...] * time_ref[...]))                  # (K, C) EUP
    xd_ref[...] = jnp.dot(evecs_ref[...], coefs * x_spec,
                          preferred_element_type=f32)                   # (V, C)


def _maxpool3_lane_blocks(z, lmask, rmask):
    """MaxPool1d(kernel=3, stride=1, padding=1) along the lane axis, applied
    independently inside contiguous lane blocks. lmask/rmask are precomputed
    additive masks: 0 inside a block, -inf where the neighbour would cross a
    block edge (== PyTorch's -inf padding)."""
    z_m1 = jnp.concatenate([z[:, :1], z[:, :-1]], axis=1) + lmask       # lane l-1
    z_p1 = jnp.concatenate([z[:, 1:], z[:, -1:]], axis=1) + rmask       # lane l+1
    # TODO(synk): at production (128-lane-multiple) widths replace the slice+
    # concat shifts with pltpu.roll(z, +/-1, axis=-1) so they ride the XLU slot.
    return jnp.maximum(jnp.maximum(z_m1, z), z_p1)


def _fused_rows_kernel(xd_ref, x_ref, gxy_ref, wmix_ref,
                       w1b_ref, b1b_ref, w2b_ref, b2b_ref, w3b_ref, b3b_ref,
                       ca_ref, cba_ref, cb_ref, cbb_ref, lmask_ref, rmask_ref,
                       out_ref):
    """Gradient features + MiniMLP + Conv1d/ReLU/MaxPool stack + residuals for
    one (tile_v, C) vertex row tile.
      xd:(V,C) resident   x:(tV,C)   gxy:(2,tV,V) bf16 row tile of [gradX;gradY]
      wmix:(2C,2C)  w*b/b*b: folded block-diag MiniMLP   ca/cba/cb/cbb: folded convs
      lmask/rmask:(1,CW*C) additive -inf pool edge masks   out:(tV,C)"""
    f32 = jnp.float32
    tv, cc = out_ref.shape
    i = pl.program_id(0)

    x = x_ref[...]                                                # (tV, C)
    row0 = pl.multiple_of(i * tv, tv)
    xd = xd_ref[pl.ds(row0, tv), :]                               # (tV, C) row slice

    # ---- SpatialGradientFeatures (with gradient rotations) ----
    gx_op = gxy_ref[0]                                            # (tV, V) bf16
    gy_op = gxy_ref[1]                                            # (tV, V) bf16
    xd_op = xd_ref[...].astype(gx_op.dtype)                       # (V, C)
    gX = jnp.dot(gx_op, xd_op, preferred_element_type=f32)        # (tV, C)
    gY = jnp.dot(gy_op, xd_op, preferred_element_type=f32)        # (tV, C)
    # four re/im matmuls fused into a single (tV,2C)@(2C,2C) mix matmul
    bmix = jnp.dot(jnp.concatenate([gX, gY], axis=-1), wmix_ref[...],
                   preferred_element_type=f32)                    # (tV, 2C)
    x_gf = jnp.tanh(gX * bmix[:, :cc] + gY * bmix[:, cc:])        # (tV, C)  EUP

    # ---- MiniMLP over the reshape(1,-1,3) rows (block-diagonal folded) ----
    # TODO(synk): nn.Dropout(p=0.5) is identity here (inference / eval mode).
    comb = jnp.concatenate([x, xd, x_gf], axis=-1)                # (tV, 3C)
    h = jnp.dot(comb, w1b_ref[...], preferred_element_type=f32) + b1b_ref[...]
    h = jnp.maximum(h, 0.0)
    h = jnp.dot(h, w2b_ref[...], preferred_element_type=f32) + b2b_ref[...]
    h = jnp.maximum(h, 0.0)
    y = jnp.dot(h, w3b_ref[...], preferred_element_type=f32) + b3b_ref[...]
    y = y + x                                                     # inner residual

    # ---- Conv1d(1->CW,k3,p1) -> pool -> relu -> Conv1d(CW->1,k3,p1) -> pool -> relu
    # (ReLU/MaxPool swapped vs. the module: identical since relu is monotone and
    #  the pool window always contains its own centre element.)
    lmask = lmask_ref[...]
    rmask = rmask_ref[...]
    z1 = jnp.dot(y, ca_ref[...], preferred_element_type=f32) + cba_ref[...]
    p1 = jnp.maximum(_maxpool3_lane_blocks(z1, lmask, rmask), 0.0)   # (tV, CW*C)
    z2 = jnp.dot(p1, cb_ref[...], preferred_element_type=f32) + cbb_ref[...]
    p2 = jnp.maximum(_maxpool3_lane_blocks(z2, lmask[:, :cc], rmask[:, :cc]), 0.0)

    # TODO(synk): out last dim C=4 is lane-sparse; at production scale pack
    # several meshes / row groups per call so stores are 128-lane dense.
    out_ref[...] = (p2 + x).astype(out_ref.dtype)                 # outer residual


# ======================= one-time weight / operand folding =====================

def _block_diag_tile(Wm, n):
    """block_diag(W, W, ..., W) with n copies, shape (n*din, n*dout)."""
    din, dout = Wm.shape
    eye = jnp.eye(n, dtype=Wm.dtype)
    return (eye[:, :, None, None] * Wm[None, None, :, :]
            ).transpose(0, 2, 1, 3).reshape(n * din, n * dout)


def _fold_mlp_weights(mlp_w, mlp_b, n_groups):
    # TODO(synk): block-diagonal folding is dense ((C-1)/C zeros); at production
    # C, use a grouped (V, C, 3) contraction instead of dense block-diag matmuls.
    W1, W2, W3 = mlp_w            # (3,16), (16,16), (16,1)
    b1, b2, b3 = mlp_b            # (1,16), (1,16), (1,1)
    return (_block_diag_tile(W1, n_groups), jnp.tile(b1, (1, n_groups)),
            _block_diag_tile(W2, n_groups), jnp.tile(b2, (1, n_groups)),
            _block_diag_tile(W3, n_groups), jnp.reshape(b3, (1, 1)))


def _fold_conv_weights(conv1_w, conv1_b, conv2_w, conv2_b, Cl):
    """Fold k=3, pad=1 Conv1d taps into plain matmul weights.
    conv1_w:(CW,3) conv1_b:(CW,) conv2_w:(CW,3) conv2_b: scalar."""
    p = jnp.arange(Cl)[:, None, None]             # input position
    l = jnp.arange(Cl)[None, :, None]             # output position
    k = jnp.arange(3)[None, None, :]              # tap
    delta = (p == l + k - 1).astype(jnp.float32)  # (Cl,Cl,3); OOB taps -> 0 (zero pad)
    ca = jnp.einsum('plk,mk->pml', delta, conv1_w).reshape(Cl, -1)   # (Cl, CW*Cl)
    cba = jnp.repeat(conv1_b, Cl)[None, :]                           # (1, CW*Cl)
    cb = jnp.einsum('plk,mk->mpl', delta, conv2_w).reshape(-1, Cl)   # (CW*Cl, Cl)
    cbb = jnp.reshape(conv2_b, (1, 1))
    return ca, cba, cb, cbb


def _choose_row_tile(n_verts, op_bytes, vmem_budget_bytes=48 << 20, target_rows=512):
    """Feedback-driven sizing: 2 gradient operators x 2 pipeline buffers of a
    (tile, V) slab must fit the VMEM budget (leaves headroom inside v7x's 64 MiB),
    preferring MXU-friendly >=256-row tiles when V allows it."""
    per_row = 2 * 2 * n_verts * op_bytes
    cap = max(8, (vmem_budget_bytes // max(per_row, 1)) // 8 * 8)
    tile = int(min(n_verts, target_rows, cap))
    tile = max(8, (tile // 8) * 8)
    while tile > 8 and n_verts % tile:
        tile -= 8
    return tile if n_verts % tile == 0 else n_verts


def prepare_block(params, mass, evals, evecs, gradX, gradY,
                  operator_dtype=jnp.bfloat16):
    """One-time (per mesh / per checkpoint) parameter + operator preparation.
    Everything here is hoisted out of the jitted per-call path."""
    Bv, Vv, Kk = evecs.shape
    assert Bv == 1                    # reshape(1,-1,3) + residual require B == 1
    Cc = params["diffusion_time"].shape[0]

    time = jnp.maximum(params["diffusion_time"], 1e-12).reshape(1, Cc)
    # SpatialGradientFeatures: fold the 4 re/im matmuls into one (2C,2C) mix:
    #   [gX gY] @ wmix = [gX@Wre - gY@Wim | gX@Wim + gY@Wre]
    wmix = jnp.concatenate(
        [jnp.concatenate([params["W_re"], params["W_im"]], axis=1),
         jnp.concatenate([-params["W_im"], params["W_re"]], axis=1)], axis=0)

    w1b, b1b, w2b, b2b, w3b, b3b = _fold_mlp_weights(
        params["mlp_w"], params["mlp_b"], Cc)
    ca, cba, cb, cbb = _fold_conv_weights(
        params["conv1_w"], params["conv1_b"],
        params["conv2_w"], params["conv2_b"], Cc)

    # MaxPool1d(3,1,1) block-edge masks: additive 0 / -inf, period Cc along lanes.
    lane = np.arange(ca.shape[1])
    lmask = jnp.asarray(np.where(lane % Cc == 0, -np.inf, 0.0)[None, :], jnp.float32)
    rmask = jnp.asarray(np.where(lane % Cc == Cc - 1, -np.inf, 0.0)[None, :],
                        jnp.float32)

    evecs0 = evecs[0]
    return dict(
        time=time,
        mass_col=mass[0].reshape(Vv, 1),
        evals_col=evals[0].reshape(Kk, 1),
        evecs=evecs0,                          # (V, K)  from_basis
        evecsT=jnp.transpose(evecs0),          # (K, V)  pre-transposed to_basis
        # [gradX; gradY] stacked once + bf16 cast for bandwidth-bound streaming
        gxy=jnp.stack([gradX[0], gradY[0]]).astype(operator_dtype),   # (2, V, V)
        wmix=wmix, w1b=w1b, b1b=b1b, w2b=w2b, b2b=b2b, w3b=w3b, b3b=b3b,
        ca=ca, cba=cba, cb=cb, cbb=cbb, lmask=lmask, rmask=rmask,
    )


# ============================ full forward (glue) ==============================

def _const_index_map(ndim):
    def index_map(i):
        return (0,) * ndim
    return index_map


def separable_block_apply(prep, x_in, *, tile_v=None):
    # x_in: (1, V, C)
    # TODO(synk): only method='spectral' diffusion is implemented (module default);
    #             the implicit_dense Cholesky path is not.
    Bv, Vv, Cc = x_in.shape
    assert Bv == 1
    x = x_in[0]

    if tile_v is None:
        tile_v = _choose_row_tile(Vv, jnp.dtype(prep["gxy"].dtype).itemsize)
    assert Vv % tile_v == 0 and tile_v % 8 == 0

    # --- prologue: spectral diffusion, O(V*K*C), one tiny gridless call ---
    x_diffuse = pl.pallas_call(
        _diffusion_kernel,
        out_shape=jax.ShapeDtypeStruct((Vv, Cc), jnp.float32),
    )(x, prep["mass_col"], prep["evecsT"], prep["evecs"],
      prep["evals_col"], prep["time"])

    # --- main: row-tiled fused gradient features + MLP + conv stack ---
    resident = [prep[n] for n in ("wmix", "w1b", "b1b", "w2b", "b2b", "w3b",
                                  "b3b", "ca", "cba", "cb", "cbb",
                                  "lmask", "rmask")]
    in_specs = (
        [pl.BlockSpec((Vv, Cc), _const_index_map(2)),            # x_diffuse (resident)
         pl.BlockSpec((tile_v, Cc), lambda i: (i, 0)),           # x row tile
         pl.BlockSpec((2, tile_v, Vv), lambda i: (0, i, 0))]     # [gradX;gradY] row tile
        + [pl.BlockSpec(a.shape, _const_index_map(a.ndim)) for a in resident])

    gxy_bytes = prep["gxy"].dtype.itemsize
    vmem_needed = (2 * 2 * tile_v * Vv * gxy_bytes               # double-buffered grad tiles
                   + 4 * Vv * Cc * 4                             # x_diffuse / x / out tiles
                   + sum(int(np.prod(a.shape)) * a.dtype.itemsize for a in resident))
    vmem_limit = int(min(64 << 20, max(16 << 20, 4 * vmem_needed)))

    out = pl.pallas_call(
        _fused_rows_kernel,
        grid=(Vv // tile_v,),
        in_specs=in_specs,
        out_specs=pl.BlockSpec((tile_v, Cc), lambda i: (i, 0)),
        out_shape=jax.ShapeDtypeStruct((Vv, Cc), jnp.float32),
        compiler_params=pltpu.CompilerParams(
            dimension_semantics=("parallel",),        # shard row tiles across TCs (v7x)
            vmem_limit_bytes=vmem_limit),
    )(x_diffuse, x, prep["gxy"], *resident)
    return out[None]


def separable_block_forward(params, x_in, mass, L, evals, evecs, gradX, gradY,
                            operator_dtype=jnp.bfloat16, tile_v=None):
    """API-parity convenience wrapper (module.forward signature).  For real use,
    call prepare_block() once per mesh and jit separable_block_apply only."""
    del L  # only needed for method='implicit_dense'
    prep = prepare_block(params, mass, evals, evecs, gradX, gradY, operator_dtype)
    return separable_block_apply(prep, x_in, tile_v=tile_v)


# ============================ pure-JAX reference ===============================

def reference_forward(params, x_in, mass, L, evals, evecs, gradX, gradY,
                      operator_dtype=None):
    del L
    x = x_in[0]
    time = jnp.maximum(params["diffusion_time"], 1e-12)
    x_spec = evecs[0].T @ (x * mass[0][:, None])
    coefs = jnp.exp(-evals[0][:, None] * time[None, :])
    x_diffuse = evecs[0] @ (coefs * x_spec)

    gx_op, gy_op, xd_op = gradX[0], gradY[0], x_diffuse
    if operator_dtype is not None:       # mirror the kernel's bf16 streaming cast
        gx_op = gx_op.astype(operator_dtype).astype(jnp.float32)
        gy_op = gy_op.astype(operator_dtype).astype(jnp.float32)
        xd_op = xd_op.astype(operator_dtype).astype(jnp.float32)
    gX = gx_op @ xd_op
    gY = gy_op @ xd_op
    br = gX @ params["W_re"] - gY @ params["W_im"]
    bi = gY @ params["W_re"] + gX @ params["W_im"]
    gf = jnp.tanh(gX * br + gY * bi)

    feat = jnp.concatenate([x, x_diffuse, gf], axis=-1).reshape(-1, 3)
    h = feat
    for i, (w, b) in enumerate(zip(params["mlp_w"], params["mlp_b"])):
        h = h @ w + b
        if i + 1 < len(params["mlp_w"]):
            h = jnp.maximum(h, 0.0)
    y = h.reshape(x.shape) + x

    def conv3(seq, w):   # conv along last axis, zero pad 1, kernel (3,)
        pad = jnp.pad(seq, [(0, 0)] * (seq.ndim - 1) + [(1, 1)])
        return w[0] * pad[..., :-2] + w[1] * pad[..., 1:-1] + w[2] * pad[..., 2:]

    def maxpool3(z):     # max pool k=3 s=1 p=1 along last axis (-inf pad)
        pad = jnp.pad(z, [(0, 0)] * (z.ndim - 1) + [(1, 1)],
                      constant_values=-jnp.inf)
        return jnp.maximum(jnp.maximum(pad[..., :-2], pad[..., 1:-1]), pad[..., 2:])

    n_cw = params["conv1_w"].shape[0]
    z1 = jnp.stack([conv3(y, params["conv1_w"][m]) for m in range(n_cw)], axis=1)
    z1 = jnp.maximum(z1 + params["conv1_b"].reshape(1, -1, 1), 0.0)
    p1 = maxpool3(z1)
    z2 = sum(conv3(p1[:, m, :], params["conv2_w"][m]) for m in range(n_cw))
    z2 = jnp.maximum(z2 + params["conv2_b"], 0.0)
    p2 = maxpool3(z2)
    return (p2 + x)[None]


# =============================== parameter init ================================

def init_params(key):
    ks = jax.random.split(key, 12)
    sizes = (3,) + HID + (1,)
    ws, bs = [], []
    for i, (din, dout) in enumerate(zip(sizes[:-1], sizes[1:])):
        ws.append(jax.random.normal(ks[3 + i], (din, dout), jnp.float32)
                  * (1.0 / np.sqrt(din)))
        bs.append(jax.random.normal(ks[6 + i], (1, dout), jnp.float32) * 0.05)
    return {
        "diffusion_time": jnp.abs(jax.random.normal(ks[0], (C,), jnp.float32)) * 0.5 + 0.1,
        "W_re": jax.random.normal(ks[1], (C, C), jnp.float32) * 0.3,
        "W_im": jax.random.normal(ks[2], (C, C), jnp.float32) * 0.3,
        "mlp_w": ws,
        "mlp_b": bs,
        "conv1_w": jax.random.normal(ks[9], (CW, 3), jnp.float32) * 0.3,   # (CW,1,3) squeezed
        "conv1_b": jax.random.normal(ks[10], (CW,), jnp.float32) * 0.05,
        "conv2_w": jax.random.normal(ks[11], (CW, 3), jnp.float32) * 0.3,  # (1,CW,3) squeezed
        "conv2_b": jnp.float32(0.02),
    }


# ==================================== main =====================================

if __name__ == "__main__":
    key = jax.random.PRNGKey(0)
    k = jax.random.split(key, 8)

    x_in = jax.random.normal(k[0], (1, V, C), jnp.float32)
    mass = jnp.abs(jax.random.normal(k[1], (1, V), jnp.float32)) + 0.5
    evals = jnp.abs(jax.random.normal(k[2], (1, K), jnp.float32))
    evecs = jax.random.normal(k[3], (1, V, K), jnp.float32) / np.sqrt(V)
    gradX = jax.random.normal(k[4], (1, V, V), jnp.float32) * 0.2
    gradY = jax.random.normal(k[5], (1, V, V), jnp.float32) * 0.2
    L = jnp.zeros((1, V, V), jnp.float32)      # unused for method='spectral'
    params = init_params(k[6])

    # One-time prep (weight folding / operator stacking / transposes / bf16 casts)
    # hoisted out of the jitted per-call path (perf feedback).
    prep = prepare_block(params, mass, evals, evecs, gradX, gradY,
                         operator_dtype=jnp.bfloat16)
    fwd = jax.jit(functools.partial(separable_block_apply, tile_v=TILE_V))
    out = jax.block_until_ready(fwd(prep, x_in))
    assert out.shape == (1, V, C)

    # Check 1: reference applying the same bf16 rounding to the streamed
    # gradient operators (validates the kernel implementation tightly).
    ref_bf16 = reference_forward(params, x_in, mass, L, evals, evecs, gradX, gradY,
                                 operator_dtype=jnp.bfloat16)
    np.testing.assert_allclose(np.asarray(out), np.asarray(ref_bf16),
                               rtol=5e-3, atol=5e-3)
    # Check 2: full-f32 module semantics (bounds the bf16 streaming error).
    ref_f32 = reference_forward(params, x_in, mass, L, evals, evecs, gradX, gradY)
    np.testing.assert_allclose(np.asarray(out), np.asarray(ref_f32),
                               rtol=5e-2, atol=5e-2)
    print("KERNEL_OK")
</pallas_src>

<mosaic_0001>
module attributes {stable_mosaic.version = 11 : i64} {
  func.func @_diffusion_kernel(%arg0: memref<64x4xf32, #tpu.memory_space<vmem>>, %arg1: memref<64x1xf32, #tpu.memory_space<vmem>>, %arg2: memref<8x64xf32, #tpu.memory_space<vmem>>, %arg3: memref<64x8xf32, #tpu.memory_space<vmem>>, %arg4: memref<8x1xf32, #tpu.memory_space<vmem>>, %arg5: memref<1x4xf32, #tpu.memory_space<vmem>>, %arg6: memref<64x4xf32, #tpu.memory_space<vmem>>) attributes {dimension_semantics = [], scalar_prefetch = 0 : i64, scratch_operands = 0 : i64, tpu.core_type = #tpu.core_type<tc>} {
    %c0 = arith.constant 0 : index
    %c0_0 = arith.constant 0 : index
    %0 = vector.load %arg0[%c0, %c0_0] : memref<64x4xf32, #tpu.memory_space<vmem>>, vector<64x4xf32>
    %c0_1 = arith.constant 0 : index
    %c0_2 = arith.constant 0 : index
    %1 = vector.load %arg1[%c0_1, %c0_2] : memref<64x1xf32, #tpu.memory_space<vmem>>, vector<64x1xf32>
    %2 = vector.broadcast %1 : vector<64x1xf32> to vector<64x4xf32>
    %3 = arith.mulf %0, %2 : vector<64x4xf32>
    %c0_3 = arith.constant 0 : index
    %c0_4 = arith.constant 0 : index
    %4 = vector.load %arg2[%c0_3, %c0_4] : memref<8x64xf32, #tpu.memory_space<vmem>>, vector<8x64xf32>
    %cst = arith.constant dense<0.000000e+00> : vector<8x4xf32>
    %5 = tpu.matmul %4, %3, %cst {dimension_numbers = #tpu.dot_dimension_numbers<[1], [0], [0], [1], [0, 0, 1, 1], [], []>} : vector<8x64xf32>, vector<64x4xf32>, vector<8x4xf32> -> vector<8x4xf32>
    %c0_5 = arith.constant 0 : index
    %c0_6 = arith.constant 0 : index
    %6 = vector.load %arg4[%c0_5, %c0_6] : memref<8x1xf32, #tpu.memory_space<vmem>>, vector<8x1xf32>
    %c0_7 = arith.constant 0 : index
    %c0_8 = arith.constant 0 : index
    %7 = vector.load %arg5[%c0_7, %c0_8] : memref<1x4xf32, #tpu.memory_space<vmem>>, vector<1x4xf32>
    %8 = vector.broadcast %6 : vector<8x1xf32> to vector<8x4xf32>
    %9 = vector.broadcast %7 : vector<1x4xf32> to vector<8x4xf32>
    %10 = arith.mulf %8, %9 : vector<8x4xf32>
    %cst_9 = arith.constant 0.000000e+00 : f32
    %11 = vector.broadcast %cst_9 : f32 to vector<8x4xf32>
    %12 = arith.subf %11, %10 : vector<8x4xf32>
    %13 = math.exp %12 : vector<8x4xf32>
    %c0_10 = arith.constant 0 : index
    %c0_11 = arith.constant 0 : index
    %14 = vector.load %arg3[%c0_10, %c0_11] : memref<64x8xf32, #tpu.memory_space<vmem>>, vector<64x8xf32>
    %15 = arith.mulf %13, %5 : vector<8x4xf32>
    %cst_12 = arith.constant dense<0.000000e+00> : vector<64x4xf32>
    %16 = tpu.matmul %14, %15, %cst_12 {dimension_numbers = #tpu.dot_dimension_numbers<[1], [0], [0], [1], [0, 0, 1, 1], [], []>} : vector<64x8xf32>, vector<8x4xf32>, vector<64x4xf32> -> vector<64x4xf32>
    %c0_13 = arith.constant 0 : index
    %c0_14 = arith.constant 0 : index
    %17 = vector.load %arg6[%c0_13, %c0_14] : memref<64x4xf32, #tpu.memory_space<vmem>>, vector<64x4xf32>
    tpu.vector_store %arg6[%c0_13, %c0_14], %16 {strides = array<i32>} : memref<64x4xf32, #tpu.memory_space<vmem>>, vector<64x4xf32>,
    return
  }
}

module attributes {stable_mosaic.version = 11 : i64} {
  func.func @_fused_rows_kernel(%arg0: i32, %arg1: memref<64x4xf32, #tpu.memory_space<vmem>>, %arg2: memref<16x4xf32, #tpu.memory_space<vmem>>, %arg3: memref<2x16x64xbf16, #tpu.memory_space<vmem>>, %arg4: memref<8x8xf32, #tpu.memory_space<vmem>>, %arg5: memref<12x64xf32, #tpu.memory_space<vmem>>, %arg6: memref<1x64xf32, #tpu.memory_space<vmem>>, %arg7: memref<64x64xf32, #tpu.memory_space<vmem>>, %arg8: memref<1x64xf32, #tpu.memory_space<vmem>>, %arg9: memref<64x4xf32, #tpu.memory_space<vmem>>, %arg10: memref<1x1xf32, #tpu.memory_space<vmem>>, %arg11: memref<4x32xf32, #tpu.memory_space<vmem>>, %arg12: memref<1x32xf32, #tpu.memory_space<vmem>>, %arg13: memref<32x4xf32, #tpu.memory_space<vmem>>, %arg14: memref<1x1xf32, #tpu.memory_space<vmem>>, %arg15: memref<1x32xf32, #tpu.memory_space<vmem>>, %arg16: memref<1x32xf32, #tpu.memory_space<vmem>>, %arg17: memref<16x4xf32, #tpu.memory_space<vmem>>) attributes {dimension_semantics = [#tpu.dimension_semantics<parallel>], iteration_bounds = array<i64: 4>, scalar_prefetch = 0 : i64, scratch_operands = 0 : i64, tpu.core_type = #tpu.core_type<tc>, window_params = [{pipeline_mode = #tpu.pipeline_mode<synchronous>, transform_indices = @transform_0, window_bounds = array<i64: 64, 4>}, {transform_indices = @transform_1, window_bounds = array<i64: 16, 4>}, {transform_indices = @transform_2, window_bounds = array<i64: 2, 16, 64>}, {pipeline_mode = #tpu.pipeline_mode<synchronous>, transform_indices = @transform_3, window_bounds = array<i64: 8, 8>}, {pipeline_mode = #tpu.pipeline_mode<synchronous>, transform_indices = @transform_4, window_bounds = array<i64: 12, 64>}, {pipeline_mode = #tpu.pipeline_mode<synchronous>, transform_indices = @transform_5, window_bounds = array<i64: 1, 64>}, {pipeline_mode = #tpu.pipeline_mode<synchronous>, transform_indices = @transform_6, window_bounds = array<i64: 64, 64>}, {pipeline_mode = #tpu.pipeline_mode<synchronous>, transform_indices = @transform_7, window_bounds = array<i64: 1, 64>}, {pipeline_mode = #tpu.pipeline_mode<synchronous>, transform_indices = @transform_8, window_bounds = array<i64: 64, 4>}, {pipeline_mode = #tpu.pipeline_mode<synchronous>, transform_indices = @transform_9, window_bounds = array<i64: 1, 1>}, {pipeline_mode = #tpu.pipeline_mode<synchronous>, transform_indices = @transform_10, window_bounds = array<i64: 4, 32>}, {pipeline_mode = #tpu.pipeline_mode<synchronous>, transform_indices = @transform_11, window_bounds = array<i64: 1, 32>}, {pipeline_mode = #tpu.pipeline_mode<synchronous>, transform_indices = @transform_12, window_bounds = array<i64: 32, 4>}, {pipeline_mode = #tpu.pipeline_mode<synchronous>, transform_indices = @transform_13, window_bounds = array<i64: 1, 1>}, {pipeline_mode = #tpu.pipeline_mode<synchronous>, transform_indices = @transform_14, window_bounds = array<i64: 1, 32>}, {pipeline_mode = #tpu.pipeline_mode<synchronous>, transform_indices = @transform_15, window_bounds = array<i64: 1, 32>}, {transform_indices = @transform_16, window_bounds = array<i64: 16, 4>}]} {
    %c0 = arith.constant 0 : index
    %c0_0 = arith.constant 0 : index
    %0 = vector.load %arg2[%c0, %c0_0] : memref<16x4xf32, #tpu.memory_space<vmem>>, vector<16x4xf32>
    %c16_i32 = arith.constant 16 : i32
    %1 = arith.muli %arg0, %c16_i32 : i32
    %2 = tpu.assume_multiple %1, 16 : i32
    %3 = arith.index_cast %2 : i32 to index
    %c0_1 = arith.constant 0 : index
    %4 = vector.load %arg1[%3, %c0_1] : memref<64x4xf32, #tpu.memory_space<vmem>>, vector<16x4xf32>
    %c0_2 = arith.constant 0 : index
    %c0_3 = arith.constant 0 : index
    %c0_4 = arith.constant 0 : index
    %5 = vector.load %arg3[%c0_2, %c0_3, %c0_4] : memref<2x16x64xbf16, #tpu.memory_space<vmem>>, vector<1x16x64xbf16>
    %6 = vector.shape_cast %5 : vector<1x16x64xbf16> to vector<16x64xbf16>
    %c1 = arith.constant 1 : index
    %c0_5 = arith.constant 0 : index
    %c0_6 = arith.constant 0 : index
    %7 = vector.load %arg3[%c1, %c0_5, %c0_6] : memref<2x16x64xbf16, #tpu.memory_space<vmem>>, vector<1x16x64xbf16>
    %8 = vector.shape_cast %7 : vector<1x16x64xbf16> to vector<16x64xbf16>
    %c0_7 = arith.constant 0 : index
    %c0_8 = arith.constant 0 : index
    %9 = vector.load %arg1[%c0_7, %c0_8] : memref<64x4xf32, #tpu.memory_space<vmem>>, vector<64x4xf32>
    %10 = arith.truncf %9 : vector<64x4xf32> to vector<64x4xbf16>
    %cst = arith.constant dense<0.000000e+00> : vector<16x4xf32>
    %11 = tpu.matmul %6, %10, %cst {dimension_numbers = #tpu.dot_dimension_numbers<[1], [0], [0], [1], [0, 0, 1, 1], [], []>} : vector<16x64xbf16>, vector<64x4xbf16>, vector<16x4xf32> -> vector<16x4xf32>
    %cst_9 = arith.constant dense<0.000000e+00> : vector<16x4xf32>
    %12 = tpu.matmul %8, %10, %cst_9 {dimension_numbers = #tpu.dot_dimension_numbers<[1], [0], [0], [1], [0, 0, 1, 1], [], []>} : vector<16x64xbf16>, vector<64x4xbf16>, vector<16x4xf32> -> vector<16x4xf32>
    %13 = tpu.concatenate %11, %12 in 1 : vector<16x4xf32>, vector<16x4xf32> -> vector<16x8xf32>
    %c0_10 = arith.constant 0 : index
    %c0_11 = arith.constant 0 : index
    %14 = vector.load %arg4[%c0_10, %c0_11] : memref<8x8xf32, #tpu.memory_space<vmem>>, vector<8x8xf32>
    %cst_12 = arith.constant dense<0.000000e+00> : vector<16x8xf32>
    %15 = tpu.matmul %13, %14, %cst_12 {dimension_numbers = #tpu.dot_dimension_numbers<[1], [0], [0], [1], [0, 0, 1, 1], [], []>} : vector<16x8xf32>, vector<8x8xf32>, vector<16x8xf32> -> vector<16x8xf32>
    %16 = vector.extract_strided_slice %15 {offsets = [0, 0], sizes = [16, 4], strides = [1, 1]} : vector<16x8xf32> to vector<16x4xf32>
    %17 = arith.mulf %11, %16 : vector<16x4xf32>
    %18 = vector.extract_strided_slice %15 {offsets = [0, 4], sizes = [16, 4], strides = [1, 1]} : vector<16x8xf32> to vector<16x4xf32>
    %19 = arith.mulf %12, %18 : vector<16x4xf32>
    %20 = arith.addf %17, %19 : vector<16x4xf32>
    %21 = math.tanh %20 : vector<16x4xf32>
    %22 = tpu.concatenate %0, %4, %21 in 1 : vector<16x4xf32>, vector<16x4xf32>, vector<16x4xf32> -> vector<16x12xf32>
    %c0_13 = arith.constant 0 : index
    %c0_14 = arith.constant 0 : index
    %23 = vector.load %arg5[%c0_13, %c0_14] : memref<12x64xf32, #tpu.memory_space<vmem>>, vector<12x64xf32>
    %cst_15 = arith.constant dense<0.000000e+00> : vector<16x64xf32>
    %24 = tpu.matmul %22, %23, %cst_15 {dimension_numbers = #tpu.dot_dimension_numbers<[1], [0], [0], [1], [0, 0, 1, 1], [], []>} : vector<16x12xf32>, vector<12x64xf32>, vector<16x64xf32> -> vector<16x64xf32>
    %c0_16 = arith.constant 0 : index
    %c0_17 = arith.constant 0 : index
    %25 = vector.load %arg6[%c0_16, %c0_17] : memref<1x64xf32, #tpu.memory_space<vmem>>, vector<1x64xf32>
    %26 = vector.broadcast %25 : vector<1x64xf32> to vector<16x64xf32>
    %27 = arith.addf %24, %26 : vector<16x64xf32>
    %cst_18 = arith.constant 0.000000e+00 : f32
    %28 = vector.broadcast %cst_18 : f32 to vector<16x64xf32>
    %29 = arith.maximumf %27, %28 : vector<16x64xf32>
    %c0_19 = arith.constant 0 : index
    %c0_20 = arith.constant 0 : index
    %30 = vector.load %arg7[%c0_19, %c0_20] : memref<64x64xf32, #tpu.memory_space<vmem>>, vector<64x64xf32>
    %cst_21 = arith.constant dense<0.000000e+00> : vector<16x64xf32>
    %31 = tpu.matmul %29, %30, %cst_21 {dimension_numbers = #tpu.dot_dimension_numbers<[1], [0], [0], [1], [0, 0, 1, 1], [], []>} : vector<16x64xf32>, vector<64x64xf32>, vector<16x64xf32> -> vector<16x64xf32>
    %c0_22 = arith.constant 0 : index
    %c0_23 = arith.constant 0 : index
    %32 = vector.load %arg8[%c0_22, %c0_23] : memref<1x64xf32, #tpu.memory_space<vmem>>, vector<1x64xf32>
    %33 = vector.broadcast %32 : vector<1x64xf32> to vector<16x64xf32>
    %34 = arith.addf %31, %33 : vector<16x64xf32>
    %cst_24 = arith.constant 0.000000e+00 : f32
    %35 = vector.broadcast %cst_24 : f32 to vector<16x64xf32>
    %36 = arith.maximumf %34, %35 : vector<16x64xf32>
    %c0_25 = arith.constant 0 : index
    %c0_26 = arith.constant 0 : index
    %37 = vector.load %arg9[%c0_25, %c0_26] : memref<64x4xf32, #tpu.memory_space<vmem>>, vector<64x4xf32>
    %cst_27 = arith.constant dense<0.000000e+00> : vector<16x4xf32>
    %38 = tpu.matmul %36, %37, %cst_27 {dimension_numbers = #tpu.dot_dimension_numbers<[1], [0], [0], [1], [0, 0, 1, 1], [], []>} : vector<16x64xf32>, vector<64x4xf32>, vector<16x4xf32> -> vector<16x4xf32>
    %c0_28 = arith.constant 0 : index
    %c0_29 = arith.constant 0 : index
    %39 = vector.load %arg10[%c0_28, %c0_29] : memref<1x1xf32, #tpu.memory_space<vmem>>, vector<1x1xf32>
    %40 = vector.broadcast %39 : vector<1x1xf32> to vector<16x4xf32>
    %41 = arith.addf %38, %40 : vector<16x4xf32>
    %42 = arith.addf %41, %0 : vector<16x4xf32>
    %c0_30 = arith.constant 0 : index
    %c0_31 = arith.constant 0 : index
    %43 = vector.load %arg15[%c0_30, %c0_31] : memref<1x32xf32, #tpu.memory_space<vmem>>, vector<1x32xf32>
    %c0_32 = arith.constant 0 : index
    %c0_33 = arith.constant 0 : index
    %44 = vector.load %arg16[%c0_32, %c0_33] : memref<1x32xf32, #tpu.memory_space<vmem>>, vector<1x32xf32>
    %c0_34 = arith.constant 0 : index
    %c0_35 = arith.constant 0 : index
    %45 = vector.load %arg11[%c0_34, %c0_35] : memref<4x32xf32, #tpu.memory_space<vmem>>, vector<4x32xf32>
    %cst_36 = arith.constant dense<0.000000e+00> : vector<16x32xf32>
    %46 = tpu.matmul %42, %45, %cst_36 {dimension_numbers = #tpu.dot_dimension_numbers<[1], [0], [0], [1], [0, 0, 1, 1], [], []>} : vector<16x4xf32>, vector<4x32xf32>, vector<16x32xf32> -> vector<16x32xf32>
    %c0_37 = arith.constant 0 : index
    %c0_38 = arith.constant 0 : index
    %47 = vector.load %arg12[%c0_37, %c0_38] : memref<1x32xf32, #tpu.memory_space<vmem>>, vector<1x32xf32>
    %48 = vector.broadcast %47 : vector<1x32xf32> to vector<16x32xf32>
    %49 = arith.addf %46, %48 : vector<16x32xf32>
    %50 = vector.extract_strided_slice %49 {offsets = [0, 0], sizes = [16, 1], strides = [1, 1]} : vector<16x32xf32> to vector<16x1xf32>
    %51 = vector.extract_strided_slice %49 {offsets = [0, 0], sizes = [16, 31], strides = [1, 1]} : vector<16x32xf32> to vector<16x31xf32>
    %52 = tpu.concatenate %50, %51 in 1 : vector<16x1xf32>, vector<16x31xf32> -> vector<16x32xf32>
    %53 = vector.broadcast %43 : vector<1x32xf32> to vector<16x32xf32>
    %54 = arith.addf %52, %53 : vector<16x32xf32>
    %55 = vector.extract_strided_slice %49 {offsets = [0, 1], sizes = [16, 31], strides = [1, 1]} : vector<16x32xf32> to vector<16x31xf32>
    %56 = vector.extract_strided_slice %49 {offsets = [0, 31], sizes = [16, 1], strides = [1, 1]} : vector<16x32xf32> to vector<16x1xf32>
    %57 = tpu.concatenate %55, %56 in 1 : vector<16x31xf32>, vector<16x1xf32> -> vector<16x32xf32>
    %58 = vector.broadcast %44 : vector<1x32xf32> to vector<16x32xf32>
    %59 = arith.addf %57, %58 : vector<16x32xf32>
    %60 = arith.maximumf %54, %49 : vector<16x32xf32>
    %61 = arith.maximumf %60, %59 : vector<16x32xf32>
    %cst_39 = arith.constant 0.000000e+00 : f32
    %62 = vector.broadcast %cst_39 : f32 to vector<16x32xf32>
    %63 = arith.maximumf %61, %62 : vector<16x32xf32>
    %c0_40 = arith.constant 0 : index
    %c0_41 = arith.constant 0 : index
    %64 = vector.load %arg13[%c0_40, %c0_41] : memref<32x4xf32, #tpu.memory_space<vmem>>, vector<32x4xf32>
    %cst_42 = arith.constant dense<0.000000e+00> : vector<16x4xf32>
    %65 = tpu.matmul %63, %64, %cst_42 {dimension_numbers = #tpu.dot_dimension_numbers<[1], [0], [0], [1], [0, 0, 1, 1], [], []>} : vector<16x32xf32>, vector<32x4xf32>, vector<16x4xf32> -> vector<16x4xf32>
    %c0_43 = arith.constant 0 : index
    %c0_44 = arith.constant 0 : index
    %66 = vector.load %arg14[%c0_43, %c0_44] : memref<1x1xf32, #tpu.memory_space<vmem>>, vector<1x1xf32>
    %67 = vector.broadcast %66 : vector<1x1xf32> to vector<16x4xf32>
    %68 = arith.addf %65, %67 : vector<16x4xf32>
    %69 = vector.extract_strided_slice %43 {offsets = [0, 0], sizes = [1, 4], strides = [1, 1]} : vector<1x32xf32> to vector<1x4xf32>
    %70 = vector.extract_strided_slice %44 {offsets = [0, 0], sizes = [1, 4], strides = [1, 1]} : vector<1x32xf32> to vector<1x4xf32>
    %71 = vector.extract_strided_slice %68 {offsets = [0, 0], sizes = [16, 1], strides = [1, 1]} : vector<16x4xf32> to vector<16x1xf32>
    %72 = vector.extract_strided_slice %68 {offsets = [0, 0], sizes = [16, 3], strides = [1, 1]} : vector<16x4xf32> to vector<16x3xf32>
    %73 = tpu.concatenate %71, %72 in 1 : vector<16x1xf32>, vector<16x3xf32> -> vector<16x4xf32>
    %74 = vector.broadcast %69 : vector<1x4xf32> to vector<16x4xf32>
    %75 = arith.addf %73, %74 : vector<16x4xf32>
    %76 = vector.extract_strided_slice %68 {offsets = [0, 1], sizes = [16, 3], strides = [1, 1]} : vector<16x4xf32> to vector<16x3xf32>
    %77 = vector.extract_strided_slice %68 {offsets = [0, 3], sizes = [16, 1], strides = [1, 1]} : vector<16x4xf32> to vector<16x1xf32>
    %78 = tpu.concatenate %76, %77 in 1 : vector<16x3xf32>, vector<16x1xf32> -> vector<16x4xf32>
    %79 = vector.broadcast %70 : vector<1x4xf32> to vector<16x4xf32>
    %80 = arith.addf %78, %79 : vector<16x4xf32>
    %81 = arith.maximumf %75, %68 : vector<16x4xf32>
    %82 = arith.maximumf %81, %80 : vector<16x4xf32>
    %cst_45 = arith.constant 0.000000e+00 : f32
    %83 = vector.broadcast %cst_45 : f32 to vector<16x4xf32>
    %84 = arith.maximumf %82, %83 : vector<16x4xf32>
    %85 = arith.addf %84, %0 : vector<16x4xf32>
    %c0_46 = arith.constant 0 : index
    %c0_47 = arith.constant 0 : index
    %86 = vector.load %arg17[%c0_46, %c0_47] : memref<16x4xf32, #tpu.memory_space<vmem>>, vector<16x4xf32>
    tpu.vector_store %arg17[%c0_46, %c0_47], %85 {strides = array<i32>} : memref<16x4xf32, #tpu.memory_space<vmem>>, vector<16x4xf32>,
    return
  }
  func.func @transform_0(%arg0: i32) -> (i32, i32) {
    %c0_i32 = arith.constant 0 : i32
    %c0_i32_0 = arith.constant 0 : i32
    %c0_i32_1 = arith.constant 0 : i32
    return %c0_i32, %c0_i32_0 : i32, i32
  }
  func.func @transform_1(%arg0: i32) -> (i32, i32) {
    %c0_i32 = arith.constant 0 : i32
    %c0_i32_0 = arith.constant 0 : i32
    return %arg0, %c0_i32 : i32, i32
  }
  func.func @transform_2(%arg0: i32) -> (i32, i32, i32) {
    %c0_i32 = arith.constant 0 : i32
    %c0_i32_0 = arith.constant 0 : i32
    %c0_i32_1 = arith.constant 0 : i32
    return %c0_i32, %arg0, %c0_i32_0 : i32, i32, i32
  }
  func.func @transform_3(%arg0: i32) -> (i32, i32) {
    %c0_i32 = arith.constant 0 : i32
    %c0_i32_0 = arith.constant 0 : i32
    %c0_i32_1 = arith.constant 0 : i32
    return %c0_i32, %c0_i32_0 : i32, i32
  }
  func.func @transform_4(%arg0: i32) -> (i32, i32) {
    %c0_i32 = arith.constant 0 : i32
    %c0_i32_0 = arith.constant 0 : i32
    %c0_i32_1 = arith.constant 0 : i32
    return %c0_i32, %c0_i32_0 : i32, i32
  }
  func.func @transform_5(%arg0: i32) -> (i32, i32) {
    %c0_i32 = arith.constant 0 : i32
    %c0_i32_0 = arith.constant 0 : i32
    %c0_i32_1 = arith.constant 0 : i32
    return %c0_i32, %c0_i32_0 : i32, i32
  }
  func.func @transform_6(%arg0: i32) -> (i32, i32) {
    %c0_i32 = arith.constant 0 : i32
    %c0_i32_0 = arith.constant 0 : i32
    %c0_i32_1 = arith.constant 0 : i32
    return %c0_i32, %c0_i32_0 : i32, i32
  }
  func.func @transform_7(%arg0: i32) -> (i32, i32) {
    %c0_i32 = arith.constant 0 : i32
    %c0_i32_0 = arith.constant 0 : i32
    %c0_i32_1 = arith.constant 0 : i32
    return %c0_i32, %c0_i32_0 : i32, i32
  }
  func.func @transform_8(%arg0: i32) -> (i32, i32) {
    %c0_i32 = arith.constant 0 : i32
    %c0_i32_0 = arith.constant 0 : i32
    %c0_i32_1 = arith.constant 0 : i32
    return %c0_i32, %c0_i32_0 : i32, i32
  }
  func.func @transform_9(%arg0: i32) -> (i32, i32) {
    %c0_i32 = arith.constant 0 : i32
    %c0_i32_0 = arith.constant 0 : i32
    %c0_i32_1 = arith.constant 0 : i32
    return %c0_i32, %c0_i32_0 : i32, i32
  }
  func.func @transform_10(%arg0: i32) -> (i32, i32) {
    %c0_i32 = arith.constant 0 : i32
    %c0_i32_0 = arith.constant 0 : i32
    %c0_i32_1 = arith.constant 0 : i32
    return %c0_i32, %c0_i32_0 : i32, i32
  }
  func.func @transform_11(%arg0: i32) -> (i32, i32) {
    %c0_i32 = arith.constant 0 : i32
    %c0_i32_0 = arith.constant 0 : i32
    %c0_i32_1 = arith.constant 0 : i32
    return %c0_i32, %c0_i32_0 : i32, i32
  }
  func.func @transform_12(%arg0: i32) -> (i32, i32) {
    %c0_i32 = arith.constant 0 : i32
    %c0_i32_0 = arith.constant 0 : i32
    %c0_i32_1 = arith.constant 0 : i32
    return %c0_i32, %c0_i32_0 : i32, i32
  }
  func.func @transform_13(%arg0: i32) -> (i32, i32) {
    %c0_i32 = arith.constant 0 : i32
    %c0_i32_0 = arith.constant 0 : i32
    %c0_i32_1 = arith.constant 0 : i32
    return %c0_i32, %c0_i32_0 : i32, i32
  }
  func.func @transform_14(%arg0: i32) -> (i32, i32) {
    %c0_i32 = arith.constant 0 : i32
    %c0_i32_0 = arith.constant 0 : i32
    %c0_i32_1 = arith.constant 0 : i32
    return %c0_i32, %c0_i32_0 : i32, i32
  }
  func.func @transform_15(%arg0: i32) -> (i32, i32) {
    %c0_i32 = arith.constant 0 : i32
    %c0_i32_0 = arith.constant 0 : i32
    %c0_i32_1 = arith.constant 0 : i32
    return %c0_i32, %c0_i32_0 : i32, i32
  }
  func.func @transform_16(%arg0: i32) -> (i32, i32) {
    %c0_i32 = arith.constant 0 : i32
    %c0_i32_0 = arith.constant 0 : i32
    return %arg0, %c0_i32 : i32, i32
  }
}

</mosaic_0001>

<bundles_post_ra>
// kernel: separable_block_apply.2
= control target key start
LH: loop header
LB: loop body
LE: loop exit
PB: predicated region body
PF: predicated region fallthrough
CT: control target
= control target key end

     0   :  { %v399_v0 = vmov 0   ;;  %v400_v5 = vmov 0.0   ;;  %vm401_vm0 = vmmov 0   ;;  %vm88_vm1 = vcmask 523264   ;;  %s558_s1 = inlined_call_operand.vmem [shape: f32[64,1], index: 1, kind: input, shape index: {}]   ;;  %s559_s4 = inlined_call_operand.vmem [shape: f32[8,1], index: 4, kind: input, shape index: {}]   ;;  %s560_s0 = inlined_call_operand.vmem [shape: f32[64,4], index: 0, kind: input, shape index: {}]   ;;  %s561_s2 = inlined_call_operand.vmem [shape: f32[8,64], index: 2, kind: input, shape index: {}]   ;;  %s562_s3 = inlined_call_operand.vmem [shape: f32[64,8], index: 3, kind: input, shape index: {}]   ;;  %s563_s5 = inlined_call_operand.vmem [shape: f32[1,4], index: 5, kind: input, shape index: {}]   ;;  %s564_s6 = inlined_call_operand.vmem [shape: f32[64,4], index: 6, kind: output, shape index: {}]  }
   0x1   :  { %396 = vset.pattern.permute.xlu1 %v399_v0  ;;  %395 = vset.pattern.permute.xlu0 %v399_v0  ;;  %v38_v1 = vld [vmem:[%s558_s1 + $0x38] sm:$0xff]  ;;  %v36_v2 = vld [vmem:[%s558_s1 + $0x28] sm:$0xff]  ;;  %v37_v3 = vld [vmem:[%s558_s1 + $0x30] sm:$0xff]  ;;  %vm188_vm2 = vcmask 64512   ;;  %vm318_vm3 = vcmask 31744  }
   0x2   :  { %76 = vperm.xlu0 %395, %v38_v1   ;;  %66 = vperm.xlu1 %396, %v36_v2   ;;  %v35_v4 = vld [vmem:[%s558_s1 + $0x20] sm:$0xff]  ;;  %v34_v6 = vld [vmem:[%s558_s1 + $0x18] sm:$0xff]  ;;  %v33_v7 = vld [vmem:[%s558_s1 + $0x10] sm:$0xff] }
   0x3   :  { %359 = vmatprep.subr.mxu0 %v400_v5  ;;  %v32_v8 = vld [vmem:[%s558_s1 + $0x8] sm:$0xff]  ;;  %v31_v9 = vld [vmem:[%s558_s1] sm:$0xff]  ;;  %375 = vmatprep.mubr.msk.f32.mxu0 %vm401_vm0, %v400_v5  ;;  %v30_v11 = vld [vmem:[%s560_s0 + $0x38] sm:$0xff] }
   0x4   :  { %v162_v10 = vld [vmem:[%s559_s4] sm:$0xff]  ;;  %v29_v15 = vld [vmem:[%s560_s0 + $0x30] sm:$0xff]  ;;  %v28_v16 = vld [vmem:[%s560_s0 + $0x28] sm:$0xff] }
   0x5   :  { %v27_v20 = vld [vmem:[%s560_s0 + $0x20] sm:$0xff]  ;;  %v26_v23 = vld [vmem:[%s560_s0 + $0x18] sm:$0xff]  ;;  %v25_v26 = vld [vmem:[%s560_s0 + $0x10] sm:$0xff] }
   0x6   :  { %71 = vperm.xlu0 %395, %v37_v3   ;;  %61 = vperm.xlu1 %396, %v35_v4   ;;  %v24_v29 = vld [vmem:[%s560_s0 + $0x8] sm:$0xff]  ;;  %v23_v32 = vld [vmem:[%s560_s0] sm:$0xff]  ;;  %v181_v47 = vld [vmem:[%s562_s3 + $0x10] sm:$0xff] }
   0x7   :  { %v87_v35 = vld [vmem:[%s561_s2] sm:$0xff]  ;;  %v180_v46 = vld [vmem:[%s562_s3 + $0x8] sm:$0xff]  ;;  %v182_v48 = vld [vmem:[%s562_s3 + $0x18] sm:$0xff] }
   0x8   :  { %v179_v36 = vld [vmem:[%s562_s3] sm:$0xff]  ;;  %v184_v50 = vld [vmem:[%s562_s3 + $0x28] sm:$0xff]  ;;  %v185_v51 = vld [vmem:[%s562_s3 + $0x30] sm:$0xff] }
   0x9   :  { %380 = vmatprep.mubr.msk.f32.mxu1 %vm188_vm2, %v179_v36  ;;  %v332_v37 = vld [vmem:[%s563_s5] ss:$0 sm:$0xff]  ;;  %v186_v52 = vld [vmem:[%s562_s3 + $0x38] sm:$0xff] }
   0xa   :  { %56 = vperm.xlu0 %395, %v34_v6   ;;  %51 = vperm.xlu1 %396, %v33_v7   ;;  %v183_v49 = vld [vmem:[%s562_s3 + $0x20] sm:$0xff] }
   0xe   :  { %46 = vperm.xlu0 %395, %v32_v8   ;;  %41 = vperm.xlu1 %396, %v31_v9  }
  0x12   :  { %166 = vperm.xlu0 %395, %v162_v10  }
  0x7d   :  { %v77_v12 = vpop.permute.xlu0 %76  ;;  %v67_v13 = vpop.permute.xlu1 %66 }
  0x7e   :  { %v86_v14 = vmul.f32 %v77_v12, %v30_v11  ;;  %v84_v21 = vmul.f32 %v67_v13, %v28_v16 }
  0x80   :  { %360 = vmatpush3.msra.mxu0 %v86_v14 }
  0x81   :  { %v72_v17 = vpop.permute.xlu0 %71  ;;  %v62_v18 = vpop.permute.xlu1 %61  ;;  %361 = vmatprep.subr.mxu0 %v400_v5 }
  0x82   :  { %v85_v19 = vmul.f32 %v72_v17, %v29_v15  ;;  %v83_v25 = vmul.f32 %v62_v18, %v27_v20 }
  0x84   :  { %362 = vmatpush3.msra.mxu0 %v85_v19 }
  0x85   :  { %v57_v22 = vpop.permute.xlu0 %56  ;;  %v52_v24 = vpop.permute.xlu1 %51  ;;  %363 = vmatprep.subr.mxu0 %v400_v5 }
  0x86   :  { %364 = vmatpush3.msra.mxu0 %v84_v21  ;;  %v82_v27 = vmul.f32 %v57_v22, %v26_v23  ;;  %v81_v30 = vmul.f32 %v52_v24, %v25_v26 }
  0x87   :  { %365 = vmatprep.subr.mxu0 %v400_v5 }
  0x88   :  { %366 = vmatpush3.msra.mxu0 %v83_v25 }
  0x89   :  { %v47_v28 = vpop.permute.xlu0 %46  ;;  %367 = vmatprep.subr.mxu0 %v400_v5  ;;  %v42_v31 = vpop.permute.xlu1 %41 }
  0x8a   :  { %368 = vmatpush3.msra.mxu0 %v82_v27  ;;  %v80_v33 = vmul.f32 %v47_v28, %v24_v29  ;;  %v79_v34 = vmul.f32 %v42_v31, %v23_v32 }
  0x8b   :  { %369 = vmatprep.subr.mxu0 %v400_v5 }
  0x8c   :  { %370 = vmatpush3.msra.mxu0 %v81_v30 }
  0x8d   :  { %371 = vmatprep.subr.mxu0 %v400_v5  ;;  %v167_v38 = vpop.permute.xlu0 %166 }
  0x8e   :  { %372 = vmatpush3.msra.mxu0 %v80_v33  ;;  %v175_v39 = vmul.f32 %v332_v37, %v167_v38 }
  0x8f   :  { %373 = vmatprep.subr.mxu0 %v400_v5 }
  0x90   :  { %374 = vmatpush3.msra.mxu0 %v79_v34  ;;  %v176_v40 = vsub.f32 0.0, %v175_v39 }
  0x91   :  { %376 = vmatmul.mubr.msk.f32.vlgmr.msra.gmra.mxu0 %vm88_vm1, %v87_v35 }
  0x92   :  { %v177_v41 = vmul.f32 1.442695, %v176_v40 }
  0x94   :  { %397 = vpow2.f32 %v177_v41 }
  0xa1   :  { %v398_v42 = vpop.eup %397 }
 0x151   :  { %v158_v43 = vpop.f32.mrf.mxu0 }
 0x152   :  { %v187_v44 = vmul.f32 %v398_v42, %v158_v43 }
 0x153   :  { %v377_v45 = vpop.f32.mrf.mxu0 }
 0x154   :  { %378 = vmatprep.subr.mxu1 %v187_v44 }
 0x155   :  { %379 = vmatpush3.msra.mxu1 %v187_v44 }
 0x156   :  { %381 = vmatmul.mubr.msk.f32.vlgmr.msra.gmra.mxu1 %vm188_vm2, %v180_v46 }
 0x157   :  { %383 = vmatprep.mubr.msk.f32.mxu1 %vm188_vm2, %v181_v47 }
 0x15a   :  { %384 = vmatmul.mubr.msk.f32.gmra.mxu1 %vm188_vm2, %v182_v48 }
 0x15b   :  { %386 = vmatprep.mubr.msk.f32.mxu1 %vm188_vm2, %v183_v49 }
 0x15e   :  { %387 = vmatmul.mubr.msk.f32.gmra.mxu1 %vm188_vm2, %v184_v50 }
 0x15f   :  { %389 = vmatprep.mubr.msk.f32.mxu1 %vm188_vm2, %v185_v51 }
 0x162   :  { %390 = vmatmul.mubr.msk.f32.gmra.mxu1 %vm188_vm2, %v186_v52 }
 0x216   :  { %v382_v53 = vpop.f32.mrf.mxu1 }
 0x217   :  { %320 = vst.msk [vmem:[%s564_s6 + $0x8] sm:$0xff] %vm318_vm3, %v382_v53 }
 0x218   :  { %v279_v54 = vpop.f32.mrf.mxu1 }
 0x219   :  { %319 = vst.msk [vmem:[%s564_s6] sm:$0xff] %vm318_vm3, %v279_v54 }
 0x21a   :  { %v385_v55 = vpop.f32.mrf.mxu1 }
 0x21b   :  { %322 = vst.msk [vmem:[%s564_s6 + $0x18] sm:$0xff] %vm318_vm3, %v385_v55 }
 0x21c   :  { %v289_v56 = vpop.f32.mrf.mxu1 }
 0x21d   :  { %321 = vst.msk [vmem:[%s564_s6 + $0x10] sm:$0xff] %vm318_vm3, %v289_v56 }
 0x21e   :  { %v388_v57 = vpop.f32.mrf.mxu1 }
 0x21f   :  { %324 = vst.msk [vmem:[%s564_s6 + $0x28] sm:$0xff] %vm318_vm3, %v388_v57 }
 0x220   :  { %v299_v58 = vpop.f32.mrf.mxu1 }
 0x221   :  { %323 = vst.msk [vmem:[%s564_s6 + $0x20] sm:$0xff] %vm318_vm3, %v299_v58 }
 0x222   :  { %v391_v59 = vpop.f32.mrf.mxu1 }
 0x223   :  { %326 = vst.msk [vmem:[%s564_s6 + $0x38] sm:$0xff] %vm318_vm3, %v391_v59 }
 0x224   :  { %v309_v60 = vpop.f32.mrf.mxu1 }
 0x225   :  { %325 = vst.msk [vmem:[%s564_s6 + $0x30] sm:$0xff] %vm318_vm3, %v309_v60 }

// kernel: separable_block_apply.3
= control target key start
LH: loop header
LB: loop body
LE: loop exit
PB: predicated region body
PF: predicated region fallthrough
CT: control target
= control target key end

     0   :  { %s2060_s0 = inlined_call_operand.vmem [shape: f32[64,4], index: 0, kind: input, shape index: {}]   ;;  %s2061_s1 = inlined_call_operand.vmem [shape: f32[64,4], index: 1, kind: input, shape index: {}]   ;;  %s2062_s2 = inlined_call_operand.vmem [shape: bf16[2,64,64], index: 2, kind: input, shape index: {}]   ;;  %s2063_s3 = inlined_call_operand.vmem [shape: f32[8,8], index: 3, kind: input, shape index: {}]   ;;  %s2064_s4 = inlined_call_operand.vmem [shape: f32[12,64], index: 4, kind: input, shape index: {}]   ;;  %s2065_s5 = inlined_call_operand.vmem [shape: f32[1,64], index: 5, kind: input, shape index: {}]   ;;  %s2066_s6 = inlined_call_operand.vmem [shape: f32[64,64], index: 6, kind: input, shape index: {}]   ;;  %s2067_s7 = inlined_call_operand.vmem [shape: f32[1,64], index: 7, kind: input, shape index: {}]   ;;  %s2068_s8 = inlined_call_operand.vmem [shape: f32[64,4], index: 8, kind: input, shape index: {}]   ;;  %s2069_s9 = inlined_call_operand.<no memory space> [shape: f32[1,1], index: 9, kind: input, shape index: {}]   ;;  %s2070_s10 = inlined_call_operand.vmem [shape: f32[4,32], index: 10, kind: input, shape index: {}]   ;;  %s2071_s11 = inlined_call_operand.vmem [shape: f32[1,32], index: 11, kind: input, shape index: {}]   ;;  %s2072_s12 = inlined_call_operand.vmem [shape: f32[32,4], index: 12, kind: input, shape index: {}]   ;;  %s2073_s14 = inlined_call_operand.vmem [shape: f32[1,32], index: 14, kind: input, shape index: {}]   ;;  %s2074_s15 = inlined_call_operand.vmem [shape: f32[1,32], index: 15, kind: input, shape index: {}]   ;;  %s2075_s16 = inlined_call_operand.vmem [shape: f32[64,4], index: 16, kind: output, shape index: {}]   ;;  %s2076_s13 = inlined_call_operand.<no memory space> [shape: f32[1,1], index: 13, kind: input, shape index: {}]  }
   0x1   :  { %2078 = sst [smem:[#allocation5_spill]] %s2060_s0  ;;  %v21_v0 = vstv %s2069_s9  ;;  %v23_v1 = vstv %s2076_s13 }
   0x2   :  { %22 = vst [vmem:[#allocation2] sm:$0x1] %v21_v0  ;;  %24 = vst [vmem:[#allocation3] sm:$0x1] %v23_v1 }
   0x3   :  { %s1838_s25 = smov 0   ;;  %s1840_s26 = smov 0  }
   0x4   :  { %s1842_s27 = smov 0  }
   0x5 LB: > { %s1496_s9 = sadd.s32 4294967295, %s1737_s27   ;;  %s1855_s13 = sadd.s32 1, %s1737_s27   ;;  %s1737_s27 = sphi %s1842_s27, %s2082_s27   ;;  %s1733_s26 = sphi %s1840_s26, %s2081_s26   ;;  %s1729_s25 = sphi %s1838_s25, %s2080_s25  }
   0x6   : > { %s81_s28 = ssub.s32 %s1737_s27, %s1855_s13  ;;  %s84_s29 = sadd.s32 1, %s1733_s26 }
   0x7   : > { %p82_p0 = scmp.eq.s32.totalorder %s81_s28, 0  ;;  %p91_p1 = scmp.ne.s32.totalorder %s1733_s26, %s1729_s25 }
   0x8   : > { %p92_p2 = scmp.eq.s32.totalorder %s1737_s27, 0  ;;  %p1499_p4 = scmp.ge.s32.totalorder %s1737_s27, 4 }
   0x9   : > { %s1864_s30 = scalar_select %p82_p0, %s1733_s26, %s84_s29  }
   0xa   : > { %p93_p3 = por %p92_p2, %p91_p1  ;;  %458 = sbr.rel (%p1499_p4) target bundleno = 21 (0x15), region = 72 }
   0xf   : > { %470 = sbr.rel (!%p93_p3) target bundleno = 21 (0x15), region = 80  ;;  %s472_s0 = sand.u32 (%p93_p3), 1, %s1733_s26  }
  0x10   : > { %s1539_s17 = sshll.u32 (%p93_p3), %s1737_s27, 3  ;;  %s1500_s18 = sshll.u32 (%p93_p3), %s472_s0, 4 }
  0x11   : > { %s477_s21 = scalar_lea.vmem (%p93_p3), %s2062_s2, %s1539_s17  ;;  %s474_s22 = scalar_lea.vmem (%p93_p3), [#allocation4], %s1500_s18 }
  0x12   : > { %v494_v2 = vld [vmem:[%s477_s21] sm:$0xff] (%p93_p3)  }
  0x13   : > { %v498_v3 = vld [vmem:[%s477_s21 + $0x20] sm:$0xff] (%p93_p3)   ;;  %495 = vst [vmem:[%s474_s22] sm:$0xff] (%p93_p3), %v494_v2  }
  0x14   : > { %499 = vst [vmem:[%s474_s22 + $0x8] sm:$0xff] %v498_v3  }
  0x15 PF: > { %p1503_p5 = scmp.ge.s32.totalorder %s1737_s27, 1  ;;  %p532_p6 = scmp.lt.s32.totalorder %s1737_s27, 5 }
  0x17   : > { %p533_p7 = pnand %p1503_p5, %p532_p6 }
  0x18   : > { %s2079_s28 = sld [smem:[#allocation5_spill]] (!%p533_p7)  ;;  %s539_s19 = sand.u32 (!%p533_p7), 1, %s1729_s25  }
  0x19   : > { %536 = sbr.rel (%p533_p7) target bundleno = 2060 (0x80c), region = 121  ;;  %s1504_s22 = sshll.u32 (!%p533_p7), %s539_s19, 4 }
  0x1a   : > { %s541_s29 = scalar_lea.vmem (!%p533_p7), [#allocation4], %s1504_s22  ;;  %s1741_s23 = smov (!%p533_p7), 4  }
  0x1b   : > { %s1509_s24 = sshll.u32 (!%p533_p7), %s1496_s9, 4  ;;  %s1742_s17 = smov (!%p533_p7), 124  }
  0x1c   : > { %s1743_s19 = smov (!%p533_p7), 8   ;;  %s1505_s20 = sshll.u32 (!%p533_p7), %s1496_s9, 1 }
  0x1d   : > { %p594_p8 = scmp.lt.s32.totalorder (!%p533_p7), %s1505_s20, 7  ;;  %s1746_s22 = smov (!%p533_p7), 127  }
  0x1e   : > { %v624_v4 = vld [vmem:[%s2079_s28 + $0x30] sm:$0xff]  ;;  %v625_v5 = vld [vmem:[%s2079_s28 + $0x38] sm:$0xff]  ;;  %v622_v6 = vld [vmem:[%s2079_s28 + $0x20] sm:$0xff]  ;;  %v1739_v7 = vmov 0.0   ;;  %vm1740_vm0 = vmmov 0   ;;  %vm635_vm1 = vcmask 523264   ;;  %s610_s0 = scalar_lea.vmem %s2079_s28, %s1509_s24 }
  0x1f   : > { %1598 = vmatprep.subr.bf16.mxu1 %v1739_v7  ;;  %v629_v8 = vpack.c.bf16 %v625_v5, %v624_v4  ;;  %v623_v9 = vld [vmem:[%s2079_s28 + $0x28] sm:$0xff]  ;;  %1606 = vmatprep.mubr.msk.bf16.mxu1 %vm1740_vm0, %v1739_v7  ;;  %v620_v11 = vld [vmem:[%s2079_s28 + $0x10] sm:$0xff]  ;;  %v621_v12 = vld [vmem:[%s2079_s28 + $0x18] sm:$0xff]  ;;  %vm737_vm2 = vcmask 31744   ;;  %vm741_vm3 = vcmask 64512   ;;  %vm875_vm4 = vcmask 1043456  }
  0x20   : > { %1586 = vmatprep.subr.bf16.mxu0 %v1739_v7  ;;  %1594 = vmatprep.mubr.msk.bf16.mxu0 %vm1740_vm0, %v1739_v7  ;;  %v628_v10 = vpack.c.bf16 %v623_v9, %v622_v6  ;;  %v627_v13 = vpack.c.bf16 %v621_v12, %v620_v11  ;;  %v618_v14 = vld [vmem:[%s2079_s28] sm:$0xff]  ;;  %v619_v15 = vld [vmem:[%s2079_s28 + $0x8] sm:$0xff]  ;;  %v963_v46 = vld [vmem:[%s2066_s6 + $0x38] sm:$0xff]  ;;  %s2084_s20 = smov (!%p594_p8, %s1505_s20), 7  ;;  %vm868_vm5 = vcmask 97280   ;;  %vm1257_vm6 = vcmask 7168  }
  0x21   : > { %1599 = vmatpush3.bf16.msra.mxu1 %v629_v8  ;;  %1587 = vmatpush3.bf16.msra.mxu0 %v629_v8  ;;  %v626_v16 = vpack.c.bf16 %v619_v15, %v618_v14  ;;  %v1709_v17 = vld [vmem:[%s541_s29 + $0x8] sm:$0xff]   ;;  %v1710_v18 = vld [vmem:[%s541_s29] sm:$0xff]   ;;  %s1506_s21 = sshll.u32 %s2084_s20, 3  ;;  %vm1274_vm7 = vcmask 252928   ;;  %vm1305_vm8 = vcmask 261120   ;;  %vm1405_vm9 = vcmask 23552  }
  0x22   : > { %1600 = vmatprep.subr.bf16.mxu1 %v1739_v7  ;;  %1588 = vmatprep.subr.bf16.mxu0 %v1739_v7  ;;  %v740_v19 = vld [vmem:[%s2063_s3] sm:$0xff]  ;;  %v612_v35 = vld [vmem:[%s610_s0 + $0x8] sm:$0xff]  ;;  %v962_v47 = vld [vmem:[%s2066_s6 + $0x30] sm:$0xff]  ;;  %s597_s24 = scalar_lea.vmem %s2061_s1, %s1506_s21 }
  0x23   : > { %v611_v33 = vld [vmem:[%s610_s0] sm:$0xff]  ;;  %v860_v36 = vld [vmem:[%s2064_s4 + $0x8] sm:$0xf]  ;;  %v959_v62 = vld [vmem:[%s2066_s6 + $0x18] sm:$0xff]  ;;  %s604_s0 = scalar_lea.vmem %s2075_s16, %s1506_s21 }
  0x24   : > { %v859_v44 = vld [vmem:[%s2064_s4] sm:$0xff]  ;;  %v961_v48 = vld [vmem:[%s2066_s6 + $0x28] sm:$0xff]  ;;  %v958_v63 = vld [vmem:[%s2066_s6 + $0x10] sm:$0xff] }
  0x25   : > { %1601 = vmatpush3.bf16.msra.mxu1 %v628_v10  ;;  %1589 = vmatpush3.bf16.msra.mxu0 %v628_v10  ;;  %v960_v49 = vld [vmem:[%s2066_s6 + $0x20] sm:$0xff]  ;;  %v1947_v57 = vld [vmem:[%s597_s24 + $0x8] sm:$0xff]  ;;  %v1061_v2 = vld [vmem:[%s2068_s8 + $0x38] sm:$0xff] }
  0x26   : > { %1602 = vmatprep.subr.bf16.mxu1 %v1739_v7  ;;  %1590 = vmatprep.subr.bf16.mxu0 %v1739_v7  ;;  %v1943_v53 = vld [vmem:[%s597_s24] sm:$0xff]  ;;  %v957_v0 = vld [vmem:[%s2066_s6 + $0x8] sm:$0xff]  ;;  %v1060_v3 = vld [vmem:[%s2068_s8 + $0x30] sm:$0xff] }
  0x27   : > { %v956_v1 = vld [vmem:[%s2066_s6] sm:$0xff]  ;;  %v1059_v4 = vld [vmem:[%s2068_s8 + $0x28] sm:$0xff]  ;;  %v1056_v14 = vld [vmem:[%s2068_s8 + $0x10] sm:$0xff] }
  0x28   : > { %v1058_v5 = vld [vmem:[%s2068_s8 + $0x20] sm:$0xff]  ;;  %v1055_v15 = vld [vmem:[%s2068_s8 + $0x8] sm:$0xff] }
  0x29   : > { %1603 = vmatpush3.bf16.msra.mxu1 %v627_v13  ;;  %1591 = vmatpush3.bf16.msra.mxu0 %v627_v13  ;;  %v1518_v6 = vld [vmem:[%s2065_s5] ss:$0 sm:$0xff]  ;;  %v1057_v13 = vld [vmem:[%s2068_s8 + $0x18] sm:$0xff] }
  0x2a   : > { %1604 = vmatprep.subr.bf16.mxu1 %v1739_v7  ;;  %1592 = vmatprep.subr.bf16.mxu0 %v1739_v7 }
  0x2d   : > { %1605 = vmatpush3.bf16.msra.mxu1 %v626_v16  ;;  %1593 = vmatpush3.bf16.msra.mxu0 %v626_v16  ;;  %v1054_v16 = vld [vmem:[%s2068_s8] sm:$0xff] }
  0x2e   : > { %1610 = vmatprep.subr.mxu0 %v740_v19  ;;  %1615 = vmatprep.subr.msk.mxu1 %vm875_vm4, %v860_v36 }
  0x30   : > { %1607 = vmatmul.mubr.msk.bf16.vlgmr.msra.gmra.mxu1 %vm635_vm1, %v1709_v17  ;;  %1595 = vmatmul.mubr.msk.bf16.vlgmr.msra.gmra.mxu0 %vm635_vm1, %v1710_v18  ;;  %v1525_v17 = vld [vmem:[#allocation2] ss:$0 sm:$0xff]  ;;  %v1744_v18 = vmov 0  }
  0x31   : > { %1611 = vmatpush3.msra.mxu0 %v740_v19  ;;  %1616 = vmatpush3.msk.msra.mxu1 %vm875_vm4, %v860_v36  ;;  %v1522_v19 = vld [vmem:[%s2067_s7] ss:$0 sm:$0xff]  ;;  %v1293_v36 = vld [vmem:[%s2072_s12 + $0x10] sm:$0xff] }
  0x32   : > { %1617 = vmatprep.subr.mxu1 %v859_v44  ;;  %1622 = vmatprep.subr.mxu0 %v963_v46 }
  0x33   : > { %1618 = vmatpush3.msra.mxu1 %v859_v44  ;;  %1708 = vset.pattern.permute.xlu0 %v1744_v18 }
  0x34   : > { %1641 = vmatprep.subr.mxu1 %v1061_v2 }
  0xf0   : > { %v722_v20 = vpop.f32.mrf.mxu1  ;;  %v673_v21 = vpop.f32.mrf.mxu0 }
  0xf1   : > { %731 = vrot.lane.b32.xlu0 %v722_v20, %s1741_s23 }
  0xf2   : > { %v1608_v22 = vpop.f32.mrf.mxu1  ;;  %v1596_v23 = vpop.f32.mrf.mxu0 }
  0xf4   : > { %v725_v24 = vpop.f32.mrf.mxu1  ;;  %v676_v25 = vpop.f32.mrf.mxu0 }
  0xf5   : > { %733 = vrot.lane.b32.xlu0 %v725_v24, %s1741_s23 }
  0xf6   : > { %v1609_v26 = vpop.f32.mrf.mxu1  ;;  %v1597_v27 = vpop.f32.mrf.mxu0 }
  0xf7   : > { %v1157_v26 = vld [vmem:[%s2070_s10] sm:$0xf] }
  0xf9   : > { %841 = vrot.lane.b32.xlu0 %v611_v33, %s1741_s23 }
 0x163   : > { %v732_v28 = vpop.permute.xlu0 %731 }
 0x164   : > { %v738_v29 = vsel %vm737_vm2, %v673_v21, %v732_v28 }
 0x165   : > { %1612 = vmatprep.mubr.msk.f32.mxu0 %vm741_vm3, %v738_v29 }
 0x167   : > { %v734_v30 = vpop.permute.xlu0 %733 }
 0x168   : > { %v739_v31 = vsel %vm737_vm2, %v676_v25, %v734_v30 }
 0x169   : > { %1613 = vmatmul.mubr.msk.f32.vlgmr.msra.gmra.mxu0 %vm741_vm3, %v739_v31 }
 0x16a   : > { %1623 = vmatpush3.msra.mxu0 %v963_v46  ;;  %v1532_v46 = vld [vmem:[%s2073_s14] ss:$0 sm:$0xff] }
 0x16b   : > { %1624 = vmatprep.subr.mxu0 %v962_v47  ;;  %v842_v52 = vpop.permute.xlu0 %841 }
 0x16c   : > { %1625 = vmatpush3.msra.mxu0 %v962_v47  ;;  %v855_v54 = vsel %vm737_vm2, %v1943_v53, %v842_v52 }
 0x16d   : > { %1626 = vmatprep.subr.mxu0 %v961_v48 }
 0x16e   : > { %1627 = vmatpush3.msra.mxu0 %v961_v48 }
 0x16f   : > { %1628 = vmatprep.subr.mxu0 %v960_v49 }
 0x170   : > { %1629 = vmatpush3.msra.mxu0 %v960_v49  ;;  %v1533_v49 = vld [vmem:[%s2074_s15] ss:$0 sm:$0xff] }
 0x171   : > { %1630 = vmatprep.subr.mxu0 %v959_v62 }
 0x172   : > { %1631 = vmatpush3.msra.mxu0 %v959_v62 }
 0x173   : > { %1632 = vmatprep.subr.mxu0 %v958_v63 }
 0x174   : > { %1633 = vmatpush3.msra.mxu0 %v958_v63 }
 0x175   : > { %1634 = vmatprep.subr.mxu0 %v957_v0 }
 0x176   : > { %1635 = vmatpush3.msra.mxu0 %v957_v0 }
 0x177   : > { %1636 = vmatprep.subr.mxu0 %v956_v1 }
 0x178   : > { %1637 = vmatpush3.msra.mxu0 %v956_v1 }
 0x179   : > { %1660 = vmatprep.subr.msk.mxu0 %vm875_vm4, %v1157_v26 }
 0x229   : > { %v1614_v32 = vpop.f32.mrf.mxu0 }
 0x22a   : > { %v824_v42 = vmul.f32 %v1614_v32, %v676_v25 }
 0x22b   : > { %v814_v34 = vpop.f32.mrf.mxu0 }
 0x22c   : > { %827 = vrot.lane.b32.xlu1 %v814_v34, %s1742_s17  ;;  %v823_v38 = vmul.f32 %v814_v34, %v673_v21  ;;  %v1294_v34 = vld [vmem:[%s2072_s12 + $0x18] sm:$0xff] }
 0x230   : > { %829 = vrot.lane.b32.xlu1 %v1614_v32, %s1742_s17 }
 0x234   : > { %843 = vrot.lane.b32.xlu1 %v612_v35, %s1741_s23  ;;  %v1528_v35 = vld [vmem:[%s2071_s11] ss:$0 sm:$0xff] }
 0x29e   : > { %v828_v37 = vpop.permute.xlu1 %827 }
 0x29f   : > { %v833_v39 = vmul.f32 %v828_v37, %v722_v20 }
 0x2a1   : > { %v835_v40 = vadd.f32 %v833_v39, %v823_v38  ;;  %v1292_v38 = vld [vmem:[%s2072_s12 + $0x8] sm:$0xff] }
 0x2a2   : > { %v830_v41 = vpop.permute.xlu1 %829 }
 0x2a3   : > { %1711 = vtanh.f32 %v835_v40  ;;  %v834_v43 = vmul.f32 %v830_v41, %v725_v24  ;;  %v1291_v41 = vld [vmem:[%s2072_s12] sm:$0xff] }
 0x2a5   : > { %v836_v45 = vadd.f32 %v834_v43, %v824_v42  ;;  %v1534_v43 = vld [vmem:[#allocation3] ss:$0 sm:$0xff] }
 0x2a6   : > { %v844_v55 = vpop.permute.xlu1 %843 }
 0x2a7   : > { %1713 = vtanh.f32 %v836_v45  ;;  %v856_v59 = vsel %vm737_vm2, %v1947_v57, %v844_v55 }
 0x2b0   : > { %v1712_v50 = vpop.eup %1711 }
 0x2b1   : > { %849 = vrot.lane.b32.xlu0 %v1712_v50, %s1743_s19 }
 0x2b4   : > { %v1714_v51 = vpop.eup %1713 }
 0x2b5   : > { %851 = vrot.lane.b32.xlu1 %v1714_v51, %s1743_s19  ;;  %1069 = vperm.xlu0 %1708, %v1525_v17   ;;  %s1745_s19 = smov 1  }
 0x323   : > { %v850_v56 = vpop.permute.xlu0 %849 }
 0x324   : > { %v857_v58 = vsel %vm741_vm3, %v855_v54, %v850_v56 }
 0x325   : > { %1619 = vmatprep.mubr.msk.f32.mxu1 %vm868_vm5, %v857_v58 }
 0x327   : > { %v852_v60 = vpop.permute.xlu1 %851 }
 0x328   : > { %v858_v61 = vsel %vm741_vm3, %v856_v59, %v852_v60 }
 0x329   : > { %1620 = vmatmul.mubr.msk.f32.vlgmr.msra.gmra.mxu1 %vm868_vm5, %v858_v61 }
 0x32a   : > { %1642 = vmatpush3.msra.mxu1 %v1061_v2 }
 0x32b   : > { %1643 = vmatprep.subr.mxu1 %v1060_v3 }
 0x32c   : > { %1644 = vmatpush3.msra.mxu1 %v1060_v3 }
 0x32d   : > { %1645 = vmatprep.subr.mxu1 %v1059_v4 }
 0x32e   : > { %1646 = vmatpush3.msra.mxu1 %v1059_v4 }
 0x32f   : > { %1647 = vmatprep.subr.mxu1 %v1058_v5 }
 0x330   : > { %1648 = vmatpush3.msra.mxu1 %v1058_v5  ;;  %v1070_v27 = vpop.permute.xlu0 %1069 }
 0x331   : > { %1649 = vmatprep.subr.mxu1 %v1057_v13 }
 0x332   : > { %1650 = vmatpush3.msra.mxu1 %v1057_v13 }
 0x333   : > { %1651 = vmatprep.subr.mxu1 %v1056_v14 }
 0x334   : > { %1652 = vmatpush3.msra.mxu1 %v1056_v14 }
 0x335   : > { %1653 = vmatprep.subr.mxu1 %v1055_v15 }
 0x336   : > { %1654 = vmatpush3.msra.mxu1 %v1055_v15 }
 0x337   : > { %1655 = vmatprep.subr.mxu1 %v1054_v16 }
 0x338   : > { %1656 = vmatpush3.msra.mxu1 %v1054_v16 }
 0x339   : > { %1665 = vmatprep.subr.mxu1 %v1294_v34 }
 0x3e9   : > { %v1621_v7 = vpop.f32.mrf.mxu1 }
 0x3ea   : > { %v951_v8 = vadd.f32 %v1621_v7, %v1518_v6 }
 0x3eb   : > { %v945_v9 = vpop.f32.mrf.mxu1 }
 0x3ec   : > { %v946_v10 = vadd.f32 %v1518_v6, %v945_v9  ;;  %v955_v12 = vmax.f32 %v951_v8, 0.0 }
 0x3ee   : > { %v954_v11 = vmax.f32 %v946_v10, 0.0 }
 0x3f0   : > { %1638 = vmatprep.mubr.msk.f32.mxu0 %vm635_vm1, %v954_v11 }
 0x3f1   : > { %1639 = vmatmul.mubr.msk.f32.vlgmr.msra.gmra.mxu0 %vm635_vm1, %v955_v12 }
 0x3f2   : > { %1661 = vmatpush3.msk.msra.mxu0 %vm875_vm4, %v1157_v26 }
 0x4b1   : > { %v1640_v20 = vpop.f32.mrf.mxu0 }
 0x4b2   : > { %v1049_v21 = vadd.f32 %v1640_v20, %v1522_v19 }
 0x4b3   : > { %v1043_v22 = vpop.f32.mrf.mxu0 }
 0x4b4   : > { %v1044_v23 = vadd.f32 %v1522_v19, %v1043_v22  ;;  %v1053_v25 = vmax.f32 %v1049_v21, 0.0 }
 0x4b6   : > { %v1052_v24 = vmax.f32 %v1044_v23, 0.0 }
 0x4b8   : > { %1657 = vmatprep.mubr.msk.f32.mxu1 %vm635_vm1, %v1052_v24 }
 0x4b9   : > { %1658 = vmatmul.mubr.msk.f32.vlgmr.msra.gmra.mxu1 %vm635_vm1, %v1053_v25 }
 0x4ba   : > { %1666 = vmatpush3.msra.mxu1 %v1294_v34 }
 0x4bb   : > { %1667 = vmatprep.subr.mxu1 %v1293_v36 }
 0x4bc   : > { %1668 = vmatpush3.msra.mxu1 %v1293_v36 }
 0x4bd   : > { %1669 = vmatprep.subr.mxu1 %v1292_v38 }
 0x4be   : > { %1670 = vmatpush3.msra.mxu1 %v1292_v38 }
 0x4bf   : > { %1671 = vmatprep.subr.mxu1 %v1291_v41 }
 0x4c0   : > { %1672 = vmatpush3.msra.mxu1 %v1291_v41 }
 0x579   : > { %v1659_v28 = vpop.f32.mrf.mxu1 }
 0x57a   : > { %v1150_v29 = vadd.f32 %v1659_v28, %v1070_v27 }
 0x57b   : > { %v1144_v30 = vpop.f32.mrf.mxu1 }
 0x57c   : > { %v1145_v31 = vadd.f32 %v1144_v30, %v1070_v27  ;;  %v1154_v33 = vadd.f32 %v1150_v29, %v1947_v57 }
 0x57e   : > { %v1153_v32 = vadd.f32 %v1145_v31, %v1943_v53 }
 0x580   : > { %1662 = vmatprep.mubr.msk.f32.mxu0 %vm737_vm2, %v1153_v32 }
 0x581   : > { %1663 = vmatmul.mubr.msk.f32.vlgmr.msra.gmra.mxu0 %vm737_vm2, %v1154_v33 }
 0x641   : > { %v1664_v37 = vpop.f32.mrf.mxu0 }
 0x642   : > { %v1246_v39 = vadd.f32 %v1664_v37, %v1528_v35 }
 0x643   : > { %v1240_v40 = vpop.f32.mrf.mxu0 }
 0x644   : > { %v1241_v42 = vadd.f32 %v1528_v35, %v1240_v40  ;;  %1253 = vrot.lane.b32.xlu1 %v1246_v39, %s1745_s19 }
 0x646   : > { %1268 = vrot.lane.b32.xlu0 %v1241_v42, %s1746_s22 }
 0x648   : > { %1251 = vrot.lane.b32.xlu1 %v1241_v42, %s1745_s19 }
 0x64a   : > { %1302 = vperm.xlu0 %1708, %v1534_v43  }
 0x64c   : > { %1270 = vrot.lane.b32.xlu1 %v1246_v39, %s1746_s22 }
 0x6b6   : > { %v1254_v44 = vpop.permute.xlu1 %1253 }
 0x6b7   : > { %v1259_v47 = vsel %vm1257_vm6, %v1246_v39, %v1254_v44 }
 0x6b8   : > { %v1269_v45 = vpop.permute.xlu0 %1268  ;;  %v1267_v52 = vadd.f32 %v1532_v46, %v1259_v47 }
 0x6b9   : > { %v1275_v50 = vsel %vm1274_vm7, %v1269_v45, %v1241_v42 }
 0x6ba   : > { %v1252_v48 = vpop.permute.xlu1 %1251  ;;  %v1283_v55 = vadd.f32 %v1533_v49, %v1275_v50  ;;  %v1286_v60 = vmax.f32 %v1267_v52, %v1246_v39 }
 0x6bb   : > { %v1258_v51 = vsel %vm1257_vm6, %v1241_v42, %v1252_v48 }
 0x6bc   : > { %v1266_v54 = vadd.f32 %v1532_v46, %v1258_v51 }
 0x6be   : > { %v1285_v56 = vmax.f32 %v1266_v54, %v1241_v42  ;;  %v1271_v58 = vpop.permute.xlu1 %1270 }
 0x6bf   : > { %v1276_v59 = vsel %vm1274_vm7, %v1271_v58, %v1246_v39 }
 0x6c0   : > { %v1287_v61 = vmax.f32 %v1285_v56, %v1283_v55  ;;  %v1284_v62 = vadd.f32 %v1533_v49, %v1276_v59 }
 0x6c2   : > { %v1289_v63 = vmax.f32 %v1287_v61, 0.0  ;;  %v1288_v0 = vmax.f32 %v1286_v60, %v1284_v62 }
 0x6c4   : > { %v1290_v1 = vmax.f32 %v1288_v0, 0.0  ;;  %1673 = vmatprep.mubr.msk.f32.mxu1 %vm1305_vm8, %v1289_v63 }
 0x6c5   : > { %v1303_v2 = vpop.permute.xlu0 %1302 }
 0x6c6   : > { %1674 = vmatmul.mubr.msk.f32.vlgmr.msra.gmra.mxu1 %vm1305_vm8, %v1290_v1 }
 0x786   : > { %v1675_v3 = vpop.f32.mrf.mxu1 }
 0x787   : > { %v1384_v4 = vadd.f32 %v1675_v3, %v1303_v2 }
 0x788   : > { %v1378_v5 = vpop.f32.mrf.mxu1 }
 0x789   : > { %v1379_v6 = vadd.f32 %v1378_v5, %v1303_v2  ;;  %1391 = vrot.lane.b32.xlu0 %v1384_v4, %s1745_s19 }
 0x78b   : > { %1389 = vrot.lane.b32.xlu1 %v1379_v6, %s1745_s19 }
 0x78d   : > { %1401 = vrot.lane.b32.xlu0 %v1384_v4, %s1746_s22 }
 0x78f   : > { %1399 = vrot.lane.b32.xlu1 %v1379_v6, %s1746_s22 }
 0x7fb   : > { %v1392_v7 = vpop.permute.xlu0 %1391 }
 0x7fc   : > { %v1396_v8 = vsel %vm1257_vm6, %v1384_v4, %v1392_v7 }
 0x7fd   : > { %v1398_v9 = vadd.f32 %v1532_v46, %v1396_v8  ;;  %v1390_v10 = vpop.permute.xlu1 %1389 }
 0x7fe   : > { %v1395_v11 = vsel %vm1257_vm6, %v1379_v6, %v1390_v10 }
 0x7ff   : > { %v1397_v12 = vadd.f32 %v1532_v46, %v1395_v11  ;;  %v1402_v13 = vpop.permute.xlu0 %1401  ;;  %v1411_v15 = vmax.f32 %v1398_v9, %v1384_v4 }
 0x800   : > { %v1407_v14 = vsel %vm1405_vm9, %v1402_v13, %v1384_v4 }
 0x801   : > { %v1409_v16 = vadd.f32 %v1533_v49, %v1407_v14  ;;  %v1400_v17 = vpop.permute.xlu1 %1399  ;;  %v1410_v19 = vmax.f32 %v1397_v12, %v1379_v6 }
 0x802   : > { %v1406_v18 = vsel %vm1405_vm9, %v1400_v17, %v1379_v6 }
 0x803   : > { %v1413_v20 = vmax.f32 %v1411_v15, %v1409_v16  ;;  %v1408_v21 = vadd.f32 %v1533_v49, %v1406_v18 }
 0x805   : > { %v1412_v22 = vmax.f32 %v1410_v19, %v1408_v21  ;;  %v1415_v23 = vmax.f32 %v1413_v20, 0.0 }
 0x807   : > { %v1414_v24 = vmax.f32 %v1412_v22, 0.0  ;;  %v1417_v26 = vadd.f32 %v1415_v23, %v1947_v57 }
 0x809   : > { %v1416_v25 = vadd.f32 %v1414_v24, %v1943_v53  ;;  %1419 = vst.msk [vmem:[%s604_s0 + $0x8] sm:$0xff] %vm737_vm2, %v1417_v26 }
 0x80b   : > { %1418 = vst.msk [vmem:[%s604_s0] sm:$0xff] %vm737_vm2, %v1416_v25 }
 0x80c PF: > { %p27_p9 = scmp.ge.s32.totalorder %s1855_s13, 6   ;;  %s2080_s25 = smov %s1733_s26 }
 0x80d   : > { %s2081_s26 = smov %s1864_s30  ;;  %s2082_s27 = smov %s1855_s13 }
 0x80e   :  { %29 = sbr.rel (!%p27_p9) target bundleno = 5 (0x5), region = 165 }

</bundles_post_ra>
